<compile_context>
chip_gen: v6e
topology: v6e:2x2x1
jax: 0.10.0
libtpu: 0.0.40
codegen_flags: <defaults>
</compile_context>

<pallas_src>
import functools
import math

import jax
import jax.numpy as jnp
from jax import lax
from jax.experimental import pallas as pl
from jax.experimental.pallas import tpu as pltpu


# ---------------------------------------------------------------------------
# Hardware-aware defaults
# ---------------------------------------------------------------------------
def _tpu_defaults():
    """(query-tile target, usable VMEM budget bytes) for the local TPU.

    * v5e MXU is 4x128^2 -> M=128 tiles are native; v6e/v7x (2x256^2) -> 256.
    * VMEM budget = 75% of physical capacity (headroom for Mosaic-managed
      scratch / semaphores / pipeline buffers).  Conservative 64 MiB capacity
      fallback (v7x-sized) if the query fails.
    """
    block_q = 256
    vmem_cap = 64 << 20
    try:
        info = pltpu.get_tpu_info()
        vmem_cap = int(getattr(info, "vmem_capacity_bytes", vmem_cap))
        name = str(getattr(info, "chip_version", "")).lower()
        if "v5e" in name or "v5lite" in name or "v5 lite" in name:
            block_q = 128
    except Exception:
        pass
    return block_q, (vmem_cap * 3) // 4


def _round_up(x, m):
    return ((x + m - 1) // m) * m


def _pick_block_rows(n, target):
    """Row-tile size: the MXU-native target, or the 8-aligned full extent."""
    if n >= target:
        return target
    return _round_up(max(n, 1), 8)


def _invariant_kwargs(single_buffer):
    """BlockSpec kwargs for grid-invariant (weight-like) blocks."""
    if single_buffer and hasattr(pl, "Buffered"):
        return dict(pipeline_mode=pl.Buffered(1))
    return {}


# ---------------------------------------------------------------------------
# Hoisted linear projection kernel (y = x @ W + b), bf16 MXU / f32 accumulate
# ---------------------------------------------------------------------------
def _linear_kernel(x_ref, w_ref, b_ref, o_ref):
    o_ref[...] = (jnp.dot(x_ref[...], w_ref[...],
                          preferred_element_type=jnp.float32)
                  + b_ref[...]).astype(o_ref.dtype)


def _project(x, w, b, block_target):
    """Row-tiled projection.  x: [R, Din] bf16, w: [Din, Dout] bf16, b: [1, Dout] f32."""
    R, Din = x.shape
    Dout = w.shape[1]
    block_r = _pick_block_rows(R, block_target)
    Rp = _round_up(R, block_r)
    if Rp != R:
        x = jnp.pad(x, ((0, Rp - R), (0, 0)))

    def build(single_buffer):
        inv = _invariant_kwargs(single_buffer)
        grid_spec = pltpu.PrefetchScalarGridSpec(
            num_scalar_prefetch=0,
            grid=(Rp // block_r,),
            in_specs=[
                pl.BlockSpec((block_r, Din), lambda i: (i, 0)),
                pl.BlockSpec((Din, Dout), lambda i: (0, 0), **inv),
                pl.BlockSpec((1, Dout), lambda i: (0, 0), **inv),
            ],
            out_specs=pl.BlockSpec((block_r, Dout), lambda i: (i, 0)),
        )
        return pl.pallas_call(
            _linear_kernel,
            out_shape=jax.ShapeDtypeStruct((Rp, Dout), jnp.bfloat16),
            grid_spec=grid_spec,
            compiler_params=pltpu.CompilerParams(
                dimension_semantics=("parallel",)),
            cost_estimate=pl.CostEstimate(
                flops=2 * Rp * Din * Dout,
                transcendentals=0,
                bytes_accessed=(Rp * Din * 2 + Din * Dout * 2 + Dout * 4
                                + Rp * Dout * 2)),
        )

    try:
        y = build(True)(x, w, b)
    except Exception:
        # Retry with default buffering; an unrelated failure re-raises here
        # unchanged, so nothing is silently swallowed.
        y = build(False)(x, w, b)
    return y[:R] if Rp != R else y


# ---------------------------------------------------------------------------
# Attention kernel (consumes pre-projected K/V/Q; one step = (batch, q-tile))
# ---------------------------------------------------------------------------
def _attn_kernel(kp_ref, vp_ref, qp_ref, mask_ref, wo_ref, bo_ref,
                 out_ref, top_ref, ctx_ref, *, head_count, dim_per_head):
    f32 = jnp.float32
    bf16 = jnp.bfloat16

    kp = kp_ref[0]                     # [Sk, D] bf16, projected
    vp = vp_ref[0]                     # [Sk, D] bf16, projected
    qp = qp_ref[0]                     # [TQ, D] bf16, projected * 1/sqrt(d)
    masked = mask_ref[0] != 0          # [TQ, Sk] bool (int8 in HBM)

    # Contract the last dims of q and k directly (no explicit transpose).
    contract_last = (((1,), (1,)), ((), ()))

    for h in range(head_count):        # head_count is small & compile-time static
        lo = h * dim_per_head
        hi = lo + dim_per_head
        scores = lax.dot_general(qp[:, lo:hi], kp[:, lo:hi], contract_last,
                                 preferred_element_type=f32)   # [TQ, Sk] f32
        if h == 0:
            # top_score is head-0 scores BEFORE masking (matches PyTorch).
            top_ref[0] = scores

        scores = jnp.where(masked, jnp.float32(-1e18), scores)
        scores = scores - jnp.max(scores, axis=-1, keepdims=True)
        p = jnp.exp(scores)
        p = p * pl.reciprocal(jnp.sum(p, axis=-1, keepdims=True), approx=True)
        # dropout: identity in eval mode
        ctx_ref[:, lo:hi] = jnp.dot(p.astype(bf16), vp[:, lo:hi],
                                    preferred_element_type=f32).astype(bf16)

    out_ref[0] = jnp.dot(ctx_ref[...], wo_ref[...],
                         preferred_element_type=f32) + bo_ref[...]


def multi_headed_attention(key, value, query, mask, params, head_count):
    """key/value: [B, Sk, D] f32, query: [B, Sq, D] f32, mask: [B, Sq, Sk] int.

    Returns (output [B, Sq, D] f32, top_score [B, Sq, Sk] f32, None).
    """
    B, Sq, D = query.shape
    Sk = key.shape[1]
    assert D % head_count == 0
    d = D // head_count

    block_target, vmem_budget = _tpu_defaults()
    bf16 = jnp.bfloat16
    inv_sqrt_d = 1.0 / math.sqrt(d)

    wk = params["wk"].astype(bf16)
    wv = params["wv"].astype(bf16)
    wq = (params["wq"] * inv_sqrt_d).astype(bf16)   # fold 1/sqrt(d) into Wq/bq
    wo = params["wo"].astype(bf16)
    bk = params["bk"].astype(jnp.float32)
    bv = params["bv"].astype(jnp.float32)
    bq = (params["bq"] * inv_sqrt_d).astype(jnp.float32)
    bo = params["bo"].astype(jnp.float32)

    # ---- Hoisted projections: computed exactly once (not per query tile) ----
    kp = _project(key.reshape(B * Sk, D).astype(bf16), wk, bk, block_target)
    vp = _project(value.reshape(B * Sk, D).astype(bf16), wv, bv, block_target)
    qp = _project(query.reshape(B * Sq, D).astype(bf16), wq, bq, block_target)
    kp = kp.reshape(B, Sk, D)
    vp = vp.reshape(B, Sk, D)
    qp = qp.reshape(B, Sq, D)

    # ---- Query tiling: large tiles, pad awkward Sq instead of shrinking ----
    block_q = _pick_block_rows(Sq, block_target)
    Sq_p = _round_up(Sq, block_q)
    mask_i8 = mask.astype(jnp.int8)
    if Sq_p != Sq:
        qp = jnp.pad(qp, ((0, 0), (0, Sq_p - Sq), (0, 0)))
        mask_i8 = jnp.pad(mask_i8, ((0, 0), (0, Sq_p - Sq), (0, 0)))
    n_q = Sq_p // block_q

    kernel = functools.partial(_attn_kernel,
                               head_count=head_count, dim_per_head=d)

    # Advisory cost estimate (projections accounted for in their own calls).
    flops = B * (4 * Sq_p * Sk * D + 2 * Sq_p * D * D)
    transcendentals = B * head_count * Sq_p * Sk
    bytes_accessed = (B * (2 * Sk * D + Sq_p * D) * 2      # kp/vp/qp (bf16)
                      + B * Sq_p * Sk * 1                   # mask (int8)
                      + D * D * 2 + D * 4                   # wo + bo
                      + B * Sq_p * D * 4                    # output
                      + B * Sq_p * Sk * 4)                  # top_score

    # VMEM budget: K/V + wo single-buffered (assume 2x as an upper bound),
    # double-buffered q/mask/out blocks, bf16 ctx scratch, f32 score headroom.
    need = (2 * (D * D * 2 + D * 4)                         # wo/bo
            + 2 * 2 * Sk * D * 2                            # kp/vp blocks
            + 2 * block_q * D * 2                           # qp block
            + 2 * block_q * Sk * 1                          # mask block
            + 2 * (block_q * D * 4 + block_q * Sk * 4)      # out + top blocks
            + block_q * D * 2                               # ctx scratch
            + 3 * block_q * Sk * 4)                         # live f32 scores/p
    vmem_limit = int(1.3 * need) + (8 << 20)
    vmem_limit = max(min(vmem_limit, vmem_budget), 16 << 20)

    def build(single_buffer):
        inv = _invariant_kwargs(single_buffer)
        kv_spec = pl.BlockSpec((1, Sk, D), lambda b, qi: (b, 0, 0), **inv)
        w_spec = pl.BlockSpec((D, D), lambda b, qi: (0, 0), **inv)
        b_spec = pl.BlockSpec((1, D), lambda b, qi: (0, 0), **inv)
        grid_spec = pltpu.PrefetchScalarGridSpec(
            num_scalar_prefetch=0,
            grid=(B, n_q),
            in_specs=[
                kv_spec,                                                   # kp
                kv_spec,                                                   # vp
                pl.BlockSpec((1, block_q, D), lambda b, qi: (b, qi, 0)),   # qp
                pl.BlockSpec((1, block_q, Sk), lambda b, qi: (b, qi, 0)),  # mask
                w_spec, b_spec,                                            # wo, bo
            ],
            out_specs=[
                pl.BlockSpec((1, block_q, D), lambda b, qi: (b, qi, 0)),   # out
                pl.BlockSpec((1, block_q, Sk), lambda b, qi: (b, qi, 0)),  # top
            ],
            scratch_shapes=[pltpu.VMEM((block_q, D), jnp.bfloat16)],       # ctx
        )
        return pl.pallas_call(
            kernel,
            out_shape=(jax.ShapeDtypeStruct((B, Sq_p, D), jnp.float32),
                       jax.ShapeDtypeStruct((B, Sq_p, Sk), jnp.float32)),
            grid_spec=grid_spec,
            compiler_params=pltpu.CompilerParams(
                dimension_semantics=("parallel", "parallel"),
                vmem_limit_bytes=vmem_limit),
            cost_estimate=pl.CostEstimate(flops=flops,
                                          transcendentals=transcendentals,
                                          bytes_accessed=bytes_accessed),
        )

    try:
        out, top = build(True)(kp, vp, qp, mask_i8, wo, bo)
    except Exception:
        # Identical specs without single-buffering; unrelated errors re-raise.
        out, top = build(False)(kp, vp, qp, mask_i8, wo, bo)

    if Sq_p != Sq:
        out = out[:, :Sq]
        top = top[:, :Sq]
    return out, top, None


# ---------------------------------------------------------------------------
# Pure-JAX reference (mirrors the PyTorch else-branch with the same bf16 casts)
# ---------------------------------------------------------------------------
def _reference(key, value, query, mask, params, head_count):
    B, Sq, D = query.shape
    Sk = key.shape[1]
    d = D // head_count
    bf = jnp.bfloat16
    inv = 1.0 / math.sqrt(d)

    def lin(x, w, b):
        return jnp.dot(x.astype(bf), w.astype(bf),
                       preferred_element_type=jnp.float32) + b

    kp = lin(key, params["wk"], params["bk"])
    vp = lin(value, params["wv"], params["bv"])
    qp = lin(query, params["wq"] * inv, params["bq"] * inv)

    def shape(x, L):
        return x.reshape(B, L, head_count, d).transpose(0, 2, 1, 3)

    kh = shape(kp, Sk).astype(bf)
    vh = shape(vp, Sk).astype(bf)
    qh = shape(qp, Sq).astype(bf)

    scores = jnp.einsum("bhqd,bhkd->bhqk", qh, kh,
                        preferred_element_type=jnp.float32)
    top = scores[:, 0]
    scores = jnp.where(mask[:, None, :, :] != 0, -1e18, scores)
    attn = jax.nn.softmax(scores, axis=-1)
    ctx = jnp.einsum("bhqk,bhkd->bhqd", attn.astype(bf), vh,
                     preferred_element_type=jnp.float32)
    ctx = ctx.transpose(0, 2, 1, 3).reshape(B, Sq, D)
    out = jnp.dot(ctx.astype(bf), params["wo"].astype(bf),
                  preferred_element_type=jnp.float32) + params["bo"]
    return out, top


def _init_params(key, model_dim):
    ks = jax.random.split(key, 8)
    s = 1.0 / math.sqrt(model_dim)

    def w(k):
        return jax.random.uniform(k, (model_dim, model_dim), jnp.float32, -s, s)

    def b(k):
        return jax.random.uniform(k, (1, model_dim), jnp.float32, -s, s)

    return {
        "wk": w(ks[0]), "bk": b(ks[1]),
        "wv": w(ks[2]), "bv": b(ks[3]),
        "wq": w(ks[4]), "bq": b(ks[5]),
        "wo": w(ks[6]), "bo": b(ks[7]),
    }


if __name__ == "__main__":
    B, S, D, H = 2, 8, 32, 4

    root = jax.random.PRNGKey(0)
    k_data, k_kv, k_q, k_params = jax.random.split(root, 4)

    key_in = jax.random.normal(k_data, (B, S, D), jnp.float32)
    value_in = jax.random.normal(k_kv, (B, S, D), jnp.float32)
    query_in = jax.random.normal(k_q, (B, S, D), jnp.float32)

    # Padding-style mask: mask out the last 2 key positions of batch element 1.
    mask = jnp.zeros((B, S, S), jnp.int32)
    mask = mask.at[1, :, -2:].set(1)

    params = _init_params(k_params, D)

    out, top_score, edge = multi_headed_attention(
        key_in, value_in, query_in, mask, params, head_count=H)
    out = jax.block_until_ready(out)
    top_score = jax.block_until_ready(top_score)

    # Correctness check against a pure-JAX reference using the same bf16/f32
    # mixed precision (tolerance also covers the approx reciprocal in softmax).
    out_ref, top_ref = _reference(key_in, value_in, query_in, mask, params, H)
    assert jnp.allclose(out, out_ref, atol=1e-2, rtol=1e-2), \
        float(jnp.max(jnp.abs(out - out_ref)))
    assert jnp.allclose(top_score, top_ref, atol=1e-2, rtol=1e-2), \
        float(jnp.max(jnp.abs(top_score - top_ref)))
    assert edge is None

    print("KERNEL_OK")
</pallas_src>

<mosaic_0001>
module attributes {stable_mosaic.version = 11 : i64} {
  func.func @_linear_kernel(%arg0: i32, %arg1: memref<16x32xbf16, #tpu.memory_space<vmem>>, %arg2: memref<32x32xbf16, #tpu.memory_space<vmem>>, %arg3: memref<1x32xf32, #tpu.memory_space<vmem>>, %arg4: memref<16x32xbf16, #tpu.memory_space<vmem>>) attributes {dimension_semantics = [#tpu.dimension_semantics<parallel>], iteration_bounds = array<i64: 1>, scalar_prefetch = 0 : i64, scratch_operands = 0 : i64, tpu.core_type = #tpu.core_type<tc>, window_params = [{transform_indices = @transform_0, window_bounds = array<i64: 16, 32>}, {pipeline_mode = #tpu.pipeline_mode<synchronous>, transform_indices = @transform_1, window_bounds = array<i64: 32, 32>}, {pipeline_mode = #tpu.pipeline_mode<synchronous>, transform_indices = @transform_2, window_bounds = array<i64: 1, 32>}, {transform_indices = @transform_3, window_bounds = array<i64: 16, 32>}]} {
    %c0 = arith.constant 0 : index
    %c0_0 = arith.constant 0 : index
    %0 = vector.load %arg1[%c0, %c0_0] : memref<16x32xbf16, #tpu.memory_space<vmem>>, vector<16x32xbf16>
    %c0_1 = arith.constant 0 : index
    %c0_2 = arith.constant 0 : index
    %1 = vector.load %arg2[%c0_1, %c0_2] : memref<32x32xbf16, #tpu.memory_space<vmem>>, vector<32x32xbf16>
    %cst = arith.constant dense<0.000000e+00> : vector<16x32xf32>
    %2 = tpu.matmul %0, %1, %cst {dimension_numbers = #tpu.dot_dimension_numbers<[1], [0], [0], [1], [0, 0, 1, 1], [], []>} : vector<16x32xbf16>, vector<32x32xbf16>, vector<16x32xf32> -> vector<16x32xf32>
    %c0_3 = arith.constant 0 : index
    %c0_4 = arith.constant 0 : index
    %3 = vector.load %arg3[%c0_3, %c0_4] : memref<1x32xf32, #tpu.memory_space<vmem>>, vector<1x32xf32>
    %4 = vector.broadcast %3 : vector<1x32xf32> to vector<16x32xf32>
    %5 = arith.addf %2, %4 : vector<16x32xf32>
    %6 = arith.truncf %5 : vector<16x32xf32> to vector<16x32xbf16>
    %c0_5 = arith.constant 0 : index
    %c0_6 = arith.constant 0 : index
    %7 = vector.load %arg4[%c0_5, %c0_6] : memref<16x32xbf16, #tpu.memory_space<vmem>>, vector<16x32xbf16>
    tpu.vector_store %arg4[%c0_5, %c0_6], %6 {strides = array<i32>} : memref<16x32xbf16, #tpu.memory_space<vmem>>, vector<16x32xbf16>,
    return
  }
  func.func @transform_0(%arg0: i32) -> (i32, i32) {
    %c0_i32 = arith.constant 0 : i32
    %c0_i32_0 = arith.constant 0 : i32
    return %arg0, %c0_i32 : i32, i32
  }
  func.func @transform_1(%arg0: i32) -> (i32, i32) {
    %c0_i32 = arith.constant 0 : i32
    %c0_i32_0 = arith.constant 0 : i32
    %c0_i32_1 = arith.constant 0 : i32
    return %c0_i32, %c0_i32_0 : i32, i32
  }
  func.func @transform_2(%arg0: i32) -> (i32, i32) {
    %c0_i32 = arith.constant 0 : i32
    %c0_i32_0 = arith.constant 0 : i32
    %c0_i32_1 = arith.constant 0 : i32
    return %c0_i32, %c0_i32_0 : i32, i32
  }
  func.func @transform_3(%arg0: i32) -> (i32, i32) {
    %c0_i32 = arith.constant 0 : i32
    %c0_i32_0 = arith.constant 0 : i32
    return %arg0, %c0_i32 : i32, i32
  }
}

module attributes {stable_mosaic.version = 11 : i64} {
  func.func @_linear_kernel(%arg0: i32, %arg1: memref<16x32xbf16, #tpu.memory_space<vmem>>, %arg2: memref<32x32xbf16, #tpu.memory_space<vmem>>, %arg3: memref<1x32xf32, #tpu.memory_space<vmem>>, %arg4: memref<16x32xbf16, #tpu.memory_space<vmem>>) attributes {dimension_semantics = [#tpu.dimension_semantics<parallel>], iteration_bounds = array<i64: 1>, scalar_prefetch = 0 : i64, scratch_operands = 0 : i64, tpu.core_type = #tpu.core_type<tc>, window_params = [{transform_indices = @transform_0, window_bounds = array<i64: 16, 32>}, {pipeline_mode = #tpu.pipeline_mode<synchronous>, transform_indices = @transform_1, window_bounds = array<i64: 32, 32>}, {pipeline_mode = #tpu.pipeline_mode<synchronous>, transform_indices = @transform_2, window_bounds = array<i64: 1, 32>}, {transform_indices = @transform_3, window_bounds = array<i64: 16, 32>}]} {
    %c0 = arith.constant 0 : index
    %c0_0 = arith.constant 0 : index
    %0 = vector.load %arg1[%c0, %c0_0] : memref<16x32xbf16, #tpu.memory_space<vmem>>, vector<16x32xbf16>
    %c0_1 = arith.constant 0 : index
    %c0_2 = arith.constant 0 : index
    %1 = vector.load %arg2[%c0_1, %c0_2] : memref<32x32xbf16, #tpu.memory_space<vmem>>, vector<32x32xbf16>
    %cst = arith.constant dense<0.000000e+00> : vector<16x32xf32>
    %2 = tpu.matmul %0, %1, %cst {dimension_numbers = #tpu.dot_dimension_numbers<[1], [0], [0], [1], [0, 0, 1, 1], [], []>} : vector<16x32xbf16>, vector<32x32xbf16>, vector<16x32xf32> -> vector<16x32xf32>
    %c0_3 = arith.constant 0 : index
    %c0_4 = arith.constant 0 : index
    %3 = vector.load %arg3[%c0_3, %c0_4] : memref<1x32xf32, #tpu.memory_space<vmem>>, vector<1x32xf32>
    %4 = vector.broadcast %3 : vector<1x32xf32> to vector<16x32xf32>
    %5 = arith.addf %2, %4 : vector<16x32xf32>
    %6 = arith.truncf %5 : vector<16x32xf32> to vector<16x32xbf16>
    %c0_5 = arith.constant 0 : index
    %c0_6 = arith.constant 0 : index
    %7 = vector.load %arg4[%c0_5, %c0_6] : memref<16x32xbf16, #tpu.memory_space<vmem>>, vector<16x32xbf16>
    tpu.vector_store %arg4[%c0_5, %c0_6], %6 {strides = array<i32>} : memref<16x32xbf16, #tpu.memory_space<vmem>>, vector<16x32xbf16>,
    return
  }
  func.func @transform_0(%arg0: i32) -> (i32, i32) {
    %c0_i32 = arith.constant 0 : i32
    %c0_i32_0 = arith.constant 0 : i32
    return %arg0, %c0_i32 : i32, i32
  }
  func.func @transform_1(%arg0: i32) -> (i32, i32) {
    %c0_i32 = arith.constant 0 : i32
    %c0_i32_0 = arith.constant 0 : i32
    %c0_i32_1 = arith.constant 0 : i32
    return %c0_i32, %c0_i32_0 : i32, i32
  }
  func.func @transform_2(%arg0: i32) -> (i32, i32) {
    %c0_i32 = arith.constant 0 : i32
    %c0_i32_0 = arith.constant 0 : i32
    %c0_i32_1 = arith.constant 0 : i32
    return %c0_i32, %c0_i32_0 : i32, i32
  }
  func.func @transform_3(%arg0: i32) -> (i32, i32) {
    %c0_i32 = arith.constant 0 : i32
    %c0_i32_0 = arith.constant 0 : i32
    return %arg0, %c0_i32 : i32, i32
  }
}

</mosaic_0001>

<bundles_post_ra>
// kernel: tpu_custom_call.1
= control target key start
LH: loop header
LB: loop body
LE: loop exit
PB: predicated region body
PF: predicated region fallthrough
CT: control target
= control target key end

     0   :  { %8 = vsyncpa [#allocation3], 0  ;;  %s292_s0 = inlined_call_operand.hbm [shape: bf16[16,32], index: 0, kind: input, shape index: {}]   ;;  %s293_s1 = inlined_call_operand.hbm [shape: bf16[32,32], index: 1, kind: input, shape index: {}]   ;;  %s294_s2 = inlined_call_operand.vmem [shape: f32[1,32], index: 2, kind: input, shape index: {}]   ;;  %s295_s3 = inlined_call_operand.hbm [shape: bf16[16,32], index: 3, kind: output, shape index: {}]  }
   0x1   :  { %9 = vsyncpa [#allocation6], 0 }
   0x2   :  { %10 = vsyncpa [#allocation4], 0  ;;  %s244_s12 = smov [#allocation2]  }
   0x3   :  { %s16_s13 = sshll.u32 %s244_s12, 4  ;;  %s17_s13 = int_to_ptr.vmem [resolvable:$true] %s16_s13 }
   0x4   :  { %s186_s14 = scalar_lea.vmem %s17_s13, 128  ;;  %p191_p1 = scmp.lt.s32.totalorder %s17_s13, %s17_s13 }
   0x5   :  { %p187_p0 = scmp.ne.s32.totalorder %s17_s13, %s186_s14  ;;  %p192_p2 = scmp.lt.s32.totalorder %s186_s14, %s186_s14 }
   0x7   :  { %p193_p3 = por %p192_p2, %p191_p1 }
   0x9   :  { %p194_p4 = pnand %p193_p3, %p187_p0 }
   0xb   :  { %197 = shalt.err (!%p194_p4)
}
   0xc   :  { %s245_s15 = smov 64   ;;  %s246_s16 = smov 4  }
   0xd   :  { %22 = dma.hbm_to_vmem [thread:$0]  %s292_s0, 128, %s17_s13, [#allocation3], %s245_s15, %s245_s15, %s246_s16  }
   0xe   :  { %s247_s19 = smov [#allocation5]  }
   0xf   :  { %s28_s20 = sshll.u32 %s247_s19, 4  ;;  %s29_s20 = int_to_ptr.vmem [resolvable:$true] %s28_s20 }
  0x10   :  { %s206_s21 = scalar_lea.vmem %s29_s20, 256  ;;  %p211_p6 = scmp.lt.s32.totalorder %s29_s20, %s29_s20 }
  0x11   :  { %p207_p5 = scmp.ne.s32.totalorder %s29_s20, %s206_s21  ;;  %p212_p7 = scmp.lt.s32.totalorder %s206_s21, %s206_s21 }
  0x13   :  { %p213_p8 = por %p212_p7, %p211_p6 }
  0x15   :  { %p214_p9 = pnand %p213_p8, %p207_p5 }
  0x17   :  { %217 = shalt.err (!%p214_p9)
}
  0x18   :  { %34 = dma.hbm_to_vmem [thread:$0]  %s293_s1, 256, %s29_s20, [#allocation6], %s245_s15, %s245_s15, %s246_s16  }
  0x19   :  { %238 = dma.done.wait [#allocation3], 128  }
  0x1a   :  { %239 = vsyncadd [#allocation3], 4294967168 }
  0x1b   :  { %240 = dma.done.wait [#allocation6], 256  }
  0x1c   :  { %241 = vsyncadd [#allocation6], 4294967040  ;;  %v248_v0 = vmov 0.0   ;;  %vm249_vm0 = vmmov 0   ;;  %v175_v1 = vld [vmem:[#allocation5 + $0x8] sm:$0xff]   ;;  %v176_v2 = vld [vmem:[#allocation5] sm:$0xff]  }
  0x1d   :  { %160 = vmatprep.subr.bf16.mxu0 %v248_v0  ;;  %164 = vmatprep.mubr.msk.bf16.mxu0 %vm249_vm0, %v248_v0  ;;  %v177_v3 = vld [vmem:[#allocation2] sm:$0xff]   ;;  %vm74_vm1 = vcmask 261120   ;;  %vm127_vm2 = vcmask 257024   ;;  %s250_s1 = smov [#allocation7]  }
  0x1e   :  { %161 = vmatpush3.bf16.msra.mxu0 %v175_v1  ;;  %v148_v4 = vld [vmem:[%s294_s2] ss:$0 sm:$0xff]  ;;  %s135_s25 = sshll.u32 %s250_s1, 4  ;;  %s136_s25 = int_to_ptr.vmem [resolvable:$true] %s135_s25 }
  0x1f   :  { %162 = vmatprep.subr.bf16.mxu0 %v248_v0  ;;  %s218_s26 = scalar_lea.vmem %s136_s25, 128  ;;  %p223_p11 = scmp.lt.s32.totalorder %s136_s25, %s136_s25 }
  0x20   :  { %p219_p10 = scmp.ne.s32.totalorder %s136_s25, %s218_s26  ;;  %p224_p12 = scmp.lt.s32.totalorder %s218_s26, %s218_s26 }
  0x22   :  { %163 = vmatpush3.bf16.msra.mxu0 %v176_v2  ;;  %p225_p13 = por %p224_p12, %p223_p11 }
  0x24   :  { %p226_p0 = pnand %p225_p13, %p219_p10 }
  0x25   :  { %165 = vmatmul.mubr.msk.bf16.vlgmr.msra.gmra.mxu0 %vm74_vm1, %v177_v3 }
  0xe5   :  { %v112_v5 = vpop.f32.mrf.mxu0 }
  0xe6   :  { %v113_v6 = vadd.f32 %v148_v4, %v112_v5 }
  0xe7   :  { %v166_v7 = vpop.f32.mrf.mxu0 }
  0xe8   :  { %v155_v8 = vpack.c.bf16 %v113_v6, %v113_v6 }
  0xe9   :  { %v115_v9 = vpop.f32.mrf.mxu0 }
  0xea   :  { %v116_v10 = vadd.f32 %v148_v4, %v115_v9  ;;  %128 = vst.msk [vmem:[#allocation7] sm:$0xf] %vm127_vm2, %v155_v8 }
  0xeb   :  { %v167_v11 = vpop.f32.mrf.mxu0 }
  0xec   :  { %v156_v12 = vpack.c.bf16 %v116_v10, %v116_v10 }
  0xee   :  { %129 = vst.msk [vmem:[#allocation7 + $0x4] sm:$0xf] %vm127_vm2, %v156_v12 }
  0xef   :  { %229 = shalt.err (!%p226_p0)
}
  0xf0   :  { %141 = dma.vmem_to_hbm [thread:$0]  %s136_s25, 128, %s295_s3, [#allocation4], %s245_s15, %s245_s15, %s246_s16  }
  0xf1   :  { %242 = dma.done.wait [#allocation4], 128  }
  0xf2   :  { %243 = vsyncadd [#allocation4], 4294967168 }
  0xf3   :  { %145 = vsyncpa [#allocation3], 1 }
  0xf4   :  { %146 = vsyncpa [#allocation6], 1 }
  0xf5   :  { %147 = vsyncpa [#allocation4], 1 }

// kernel: tpu_custom_call.1
= control target key start
LH: loop header
LB: loop body
LE: loop exit
PB: predicated region body
PF: predicated region fallthrough
CT: control target
= control target key end

     0   :  { %8 = vsyncpa [#allocation3], 0  ;;  %s292_s0 = inlined_call_operand.hbm [shape: bf16[16,32], index: 0, kind: input, shape index: {}]   ;;  %s293_s1 = inlined_call_operand.hbm [shape: bf16[32,32], index: 1, kind: input, shape index: {}]   ;;  %s294_s2 = inlined_call_operand.vmem [shape: f32[1,32], index: 2, kind: input, shape index: {}]   ;;  %s295_s3 = inlined_call_operand.hbm [shape: bf16[16,32], index: 3, kind: output, shape index: {}]  }
   0x1   :  { %9 = vsyncpa [#allocation6], 0 }
   0x2   :  { %10 = vsyncpa [#allocation4], 0  ;;  %s244_s12 = smov [#allocation2]  }
   0x3   :  { %s16_s13 = sshll.u32 %s244_s12, 4  ;;  %s17_s13 = int_to_ptr.vmem [resolvable:$true] %s16_s13 }
   0x4   :  { %s186_s14 = scalar_lea.vmem %s17_s13, 128  ;;  %p191_p1 = scmp.lt.s32.totalorder %s17_s13, %s17_s13 }
   0x5   :  { %p187_p0 = scmp.ne.s32.totalorder %s17_s13, %s186_s14  ;;  %p192_p2 = scmp.lt.s32.totalorder %s186_s14, %s186_s14 }
   0x7   :  { %p193_p3 = por %p192_p2, %p191_p1 }
   0x9   :  { %p194_p4 = pnand %p193_p3, %p187_p0 }
   0xb   :  { %197 = shalt.err (!%p194_p4)
}
   0xc   :  { %s245_s15 = smov 64   ;;  %s246_s16 = smov 4  }
   0xd   :  { %22 = dma.hbm_to_vmem [thread:$0]  %s292_s0, 128, %s17_s13, [#allocation3], %s245_s15, %s245_s15, %s246_s16  }
   0xe   :  { %s247_s19 = smov [#allocation5]  }
   0xf   :  { %s28_s20 = sshll.u32 %s247_s19, 4  ;;  %s29_s20 = int_to_ptr.vmem [resolvable:$true] %s28_s20 }
  0x10   :  { %s206_s21 = scalar_lea.vmem %s29_s20, 256  ;;  %p211_p6 = scmp.lt.s32.totalorder %s29_s20, %s29_s20 }
  0x11   :  { %p207_p5 = scmp.ne.s32.totalorder %s29_s20, %s206_s21  ;;  %p212_p7 = scmp.lt.s32.totalorder %s206_s21, %s206_s21 }
  0x13   :  { %p213_p8 = por %p212_p7, %p211_p6 }
  0x15   :  { %p214_p9 = pnand %p213_p8, %p207_p5 }
  0x17   :  { %217 = shalt.err (!%p214_p9)
}
  0x18   :  { %34 = dma.hbm_to_vmem [thread:$0]  %s293_s1, 256, %s29_s20, [#allocation6], %s245_s15, %s245_s15, %s246_s16  }
  0x19   :  { %238 = dma.done.wait [#allocation3], 128  }
  0x1a   :  { %239 = vsyncadd [#allocation3], 4294967168 }
  0x1b   :  { %240 = dma.done.wait [#allocation6], 256  }
  0x1c   :  { %241 = vsyncadd [#allocation6], 4294967040  ;;  %v248_v0 = vmov 0.0   ;;  %vm249_vm0 = vmmov 0   ;;  %v175_v1 = vld [vmem:[#allocation5 + $0x8] sm:$0xff]   ;;  %v176_v2 = vld [vmem:[#allocation5] sm:$0xff]  }
  0x1d   :  { %160 = vmatprep.subr.bf16.mxu0 %v248_v0  ;;  %164 = vmatprep.mubr.msk.bf16.mxu0 %vm249_vm0, %v248_v0  ;;  %v177_v3 = vld [vmem:[#allocation2] sm:$0xff]   ;;  %vm74_vm1 = vcmask 261120   ;;  %vm127_vm2 = vcmask 257024   ;;  %s250_s1 = smov [#allocation7]  }
  0x1e   :  { %161 = vmatpush3.bf16.msra.mxu0 %v175_v1  ;;  %v148_v4 = vld [vmem:[%s294_s2] ss:$0 sm:$0xff]  ;;  %s135_s25 = sshll.u32 %s250_s1, 4  ;;  %s136_s25 = int_to_ptr.vmem [resolvable:$true] %s135_s25 }
  0x1f   :  { %162 = vmatprep.subr.bf16.mxu0 %v248_v0  ;;  %s218_s26 = scalar_lea.vmem %s136_s25, 128  ;;  %p223_p11 = scmp.lt.s32.totalorder %s136_s25, %s136_s25 }
  0x20   :  { %p219_p10 = scmp.ne.s32.totalorder %s136_s25, %s218_s26  ;;  %p224_p12 = scmp.lt.s32.totalorder %s218_s26, %s218_s26 }
  0x22   :  { %163 = vmatpush3.bf16.msra.mxu0 %v176_v2  ;;  %p225_p13 = por %p224_p12, %p223_p11 }
  0x24   :  { %p226_p0 = pnand %p225_p13, %p219_p10 }
  0x25   :  { %165 = vmatmul.mubr.msk.bf16.vlgmr.msra.gmra.mxu0 %vm74_vm1, %v177_v3 }
  0xe5   :  { %v112_v5 = vpop.f32.mrf.mxu0 }
  0xe6   :  { %v113_v6 = vadd.f32 %v148_v4, %v112_v5 }
  0xe7   :  { %v166_v7 = vpop.f32.mrf.mxu0 }
  0xe8   :  { %v155_v8 = vpack.c.bf16 %v113_v6, %v113_v6 }
  0xe9   :  { %v115_v9 = vpop.f32.mrf.mxu0 }
  0xea   :  { %v116_v10 = vadd.f32 %v148_v4, %v115_v9  ;;  %128 = vst.msk [vmem:[#allocation7] sm:$0xf] %vm127_vm2, %v155_v8 }
  0xeb   :  { %v167_v11 = vpop.f32.mrf.mxu0 }
  0xec   :  { %v156_v12 = vpack.c.bf16 %v116_v10, %v116_v10 }
  0xee   :  { %129 = vst.msk [vmem:[#allocation7 + $0x4] sm:$0xf] %vm127_vm2, %v156_v12 }
  0xef   :  { %229 = shalt.err (!%p226_p0)
}
  0xf0   :  { %141 = dma.vmem_to_hbm [thread:$0]  %s136_s25, 128, %s295_s3, [#allocation4], %s245_s15, %s245_s15, %s246_s16  }
  0xf1   :  { %242 = dma.done.wait [#allocation4], 128  }
  0xf2   :  { %243 = vsyncadd [#allocation4], 4294967168 }
  0xf3   :  { %145 = vsyncpa [#allocation3], 1 }
  0xf4   :  { %146 = vsyncpa [#allocation6], 1 }
  0xf5   :  { %147 = vsyncpa [#allocation4], 1 }

</bundles_post_ra>
